<compile_context>
chip_gen: v6e
topology: v6e:2x2x1
jax: 0.10.0
libtpu: 0.0.40
codegen_flags: <defaults>
</compile_context>

<pallas_src>
import jax
import jax.numpy as jnp
from jax.experimental import pallas as pl
from jax.experimental.pallas import tpu as pltpu

IN_F = 28 * 28   # 784
H1_F = 128
H2_F = 64
OUT_F = 10
OUT_PAD = 128    # lane-dense padded logits width


def _round_up(n, m):
    return ((n + m - 1) // m) * m


def _cdiv(a, b):
    return -(-a // b)


def mlp_kernel(x_ref, w1_ref, b1_ref, w2_ref, b2_ref, w3_ref, b3_ref, o_ref):
    # f32 -> bf16 cast happens here on the VPU (saves a separate HBM pass).
    x = x_ref[...].astype(jnp.bfloat16)
    # fc1 + ReLU  (bf16 x @ bf16 W -> f32 accumulate, f32 bias)
    h1 = jnp.dot(x, w1_ref[...], preferred_element_type=jnp.float32)
    h1 = jnp.maximum(h1 + b1_ref[...], 0.0).astype(jnp.bfloat16)
    # fc2 + ReLU
    h2 = jnp.dot(h1, w2_ref[...], preferred_element_type=jnp.float32)
    h2 = jnp.maximum(h2 + b2_ref[...], 0.0).astype(jnp.bfloat16)
    # fc3 (logits; output columns 10..127 are zero-padded weights/bias)
    out = jnp.dot(h2, w3_ref[...], preferred_element_type=jnp.float32)
    o_ref[...] = (out + b3_ref[...]).astype(o_ref.dtype)   # bf16 store


def mnist_mlp_forward(x, params, tb=4096):
    """x: (B, 1, 28, 28) or (B, 784). Returns (B, 10) f32 logits."""
    w1, b1, w2, b2, w3, b3 = params

    x2d = x.reshape(-1, IN_F).astype(jnp.float32)   # == torch x.view(-1, 784)
    B = x2d.shape[0]

    # --- Balanced batch tiling -------------------------------------------
    # ceil(B / tb) tiles, but at least 2 (when B is big enough for 2x16-row
    # tiles) so v7x's two TensorCores can split the "parallel" batch axis.
    n_tiles = _cdiv(B, tb)
    if B >= 32:
        n_tiles = max(n_tiles, 2)
    TB = _round_up(_cdiv(B, n_tiles), 16)           # multiple of 16 (bf16 sublanes)
    B_pad = _round_up(B, TB)
    if B_pad != B:
        x2d = jnp.pad(x2d, ((0, B_pad - B), (0, 0)))
    grid = (B_pad // TB,)

    # --- Operands ----------------------------------------------------------
    # Weights in bf16 (bf16 MXU path, half the resident bytes); biases f32.
    w1_bf = w1.astype(jnp.bfloat16)
    w2_bf = w2.astype(jnp.bfloat16)
    b1_f = b1.reshape(1, H1_F).astype(jnp.float32)
    b2_f = b2.reshape(1, H2_F).astype(jnp.float32)

    # Lane-dense final layer: pad 10 -> 128 output columns with zeros.
    w3_p = jnp.zeros((H2_F, OUT_PAD), jnp.bfloat16).at[:, :OUT_F].set(
        w3.astype(jnp.bfloat16))
    b3_p = jnp.zeros((1, OUT_PAD), jnp.float32).at[:, :OUT_F].set(
        b3.reshape(1, OUT_F).astype(jnp.float32))

    # x / out stream per batch tile; weights & biases resident (block index 0).
    x_spec = pl.BlockSpec((TB, IN_F), lambda i: (i, 0))        # f32 in HBM
    o_spec = pl.BlockSpec((TB, OUT_PAD), lambda i: (i, 0))     # bf16 out
    resident = lambda shape: pl.BlockSpec(shape, lambda i: (0, 0))

    out_padded = pl.pallas_call(
        mlp_kernel,
        out_shape=jax.ShapeDtypeStruct((B_pad, OUT_PAD), jnp.bfloat16),
        grid_spec=pltpu.PrefetchScalarGridSpec(
            num_scalar_prefetch=0,
            grid=grid,
            in_specs=[
                x_spec,                       # x         (TB, 784)  f32
                resident((IN_F, H1_F)),       # w1        (784, 128) bf16
                resident((1, H1_F)),          # b1        (1, 128)   f32
                resident((H1_F, H2_F)),       # w2        (128, 64)  bf16
                resident((1, H2_F)),          # b2        (1, 64)    f32
                resident((H2_F, OUT_PAD)),    # w3 padded (64, 128)  bf16
                resident((1, OUT_PAD)),       # b3 padded (1, 128)   f32
            ],
            out_specs=o_spec,
        ),
        compiler_params=pltpu.CompilerParams(
            dimension_semantics=("parallel",),   # v7x: shard batch over 2 TCs
            vmem_limit_bytes=48 * 1024 * 1024,   # ~27 MiB used at TB=4096; safe on v7x
        ),
    )(x2d, w1_bf, b1_f, w2_bf, b2_f, w3_p, b3_p)

    # Slice off pad rows/columns; return f32 logits (tiny 10-col cast).
    return out_padded[:B, :OUT_F].astype(jnp.float32)


def init_params(key):
    """Deterministic init matching nn.Linear shapes (stored as (in, out))."""
    ks = jax.random.split(key, 6)

    def linear(kw, kb, fan_in, fan_out):
        bound = 1.0 / jnp.sqrt(fan_in)
        w = jax.random.uniform(kw, (fan_in, fan_out), jnp.float32, -bound, bound)
        b = jax.random.uniform(kb, (1, fan_out), jnp.float32, -bound, bound)
        return w, b

    w1, b1 = linear(ks[0], ks[1], IN_F, H1_F)
    w2, b2 = linear(ks[2], ks[3], H1_F, H2_F)
    w3, b3 = linear(ks[4], ks[5], H2_F, OUT_F)
    return (w1, b1, w2, b2, w3, b3)


if __name__ == "__main__":
    key = jax.random.PRNGKey(0)
    k_x, k_p = jax.random.split(key)

    B = 8
    x = jax.random.normal(k_x, (B, 1, 28, 28), jnp.float32)  # NCHW, like MNIST
    params = init_params(k_p)

    logits = mnist_mlp_forward(x, params)
    jax.block_until_ready(logits)

    # Reference check in plain JAX (f32); bf16 operands/logits -> loose tol.
    w1, b1, w2, b2, w3, b3 = params
    x2d = x.reshape(-1, IN_F)
    h1 = jnp.maximum(x2d @ w1 + b1, 0.0)
    h2 = jnp.maximum(h1 @ w2 + b2, 0.0)
    ref = h2 @ w3 + b3
    assert logits.shape == (B, OUT_F)
    assert logits.dtype == jnp.float32
    assert jnp.allclose(logits, ref, atol=3e-2, rtol=3e-2), (
        float(jnp.max(jnp.abs(logits - ref))))

    print("KERNEL_OK")
</pallas_src>

<mosaic_0001>
module attributes {stable_mosaic.version = 11 : i64} {
  func.func @mlp_kernel(%arg0: i32, %arg1: memref<16x784xf32, #tpu.memory_space<vmem>>, %arg2: memref<784x128xbf16, #tpu.memory_space<vmem>>, %arg3: memref<1x128xf32, #tpu.memory_space<vmem>>, %arg4: memref<128x64xbf16, #tpu.memory_space<vmem>>, %arg5: memref<1x64xf32, #tpu.memory_space<vmem>>, %arg6: memref<64x128xbf16, #tpu.memory_space<vmem>>, %arg7: memref<1x128xf32, #tpu.memory_space<vmem>>, %arg8: memref<16x128xbf16, #tpu.memory_space<vmem>>) attributes {dimension_semantics = [#tpu.dimension_semantics<parallel>], iteration_bounds = array<i64: 1>, scalar_prefetch = 0 : i64, scratch_operands = 0 : i64, tpu.core_type = #tpu.core_type<tc>, window_params = [{transform_indices = @transform_0, window_bounds = array<i64: 16, 784>}, {pipeline_mode = #tpu.pipeline_mode<synchronous>, transform_indices = @transform_1, window_bounds = array<i64: 784, 128>}, {pipeline_mode = #tpu.pipeline_mode<synchronous>, transform_indices = @transform_2, window_bounds = array<i64: 1, 128>}, {pipeline_mode = #tpu.pipeline_mode<synchronous>, transform_indices = @transform_3, window_bounds = array<i64: 128, 64>}, {pipeline_mode = #tpu.pipeline_mode<synchronous>, transform_indices = @transform_4, window_bounds = array<i64: 1, 64>}, {pipeline_mode = #tpu.pipeline_mode<synchronous>, transform_indices = @transform_5, window_bounds = array<i64: 64, 128>}, {pipeline_mode = #tpu.pipeline_mode<synchronous>, transform_indices = @transform_6, window_bounds = array<i64: 1, 128>}, {transform_indices = @transform_7, window_bounds = array<i64: 16, 128>}]} {
    %c0 = arith.constant 0 : index
    %c0_0 = arith.constant 0 : index
    %0 = vector.load %arg1[%c0, %c0_0] : memref<16x784xf32, #tpu.memory_space<vmem>>, vector<16x784xf32>
    %1 = arith.truncf %0 : vector<16x784xf32> to vector<16x784xbf16>
    %c0_1 = arith.constant 0 : index
    %c0_2 = arith.constant 0 : index
    %2 = vector.load %arg2[%c0_1, %c0_2] : memref<784x128xbf16, #tpu.memory_space<vmem>>, vector<784x128xbf16>
    %cst = arith.constant dense<0.000000e+00> : vector<16x128xf32>
    %3 = tpu.matmul %1, %2, %cst {dimension_numbers = #tpu.dot_dimension_numbers<[1], [0], [0], [1], [0, 0, 1, 1], [], []>} : vector<16x784xbf16>, vector<784x128xbf16>, vector<16x128xf32> -> vector<16x128xf32>
    %c0_3 = arith.constant 0 : index
    %c0_4 = arith.constant 0 : index
    %4 = vector.load %arg3[%c0_3, %c0_4] : memref<1x128xf32, #tpu.memory_space<vmem>>, vector<1x128xf32>
    %5 = vector.broadcast %4 : vector<1x128xf32> to vector<16x128xf32>
    %6 = arith.addf %3, %5 : vector<16x128xf32>
    %cst_5 = arith.constant 0.000000e+00 : f32
    %7 = vector.broadcast %cst_5 : f32 to vector<16x128xf32>
    %8 = arith.maximumf %6, %7 : vector<16x128xf32>
    %9 = arith.truncf %8 : vector<16x128xf32> to vector<16x128xbf16>
    %c0_6 = arith.constant 0 : index
    %c0_7 = arith.constant 0 : index
    %10 = vector.load %arg4[%c0_6, %c0_7] : memref<128x64xbf16, #tpu.memory_space<vmem>>, vector<128x64xbf16>
    %cst_8 = arith.constant dense<0.000000e+00> : vector<16x64xf32>
    %11 = tpu.matmul %9, %10, %cst_8 {dimension_numbers = #tpu.dot_dimension_numbers<[1], [0], [0], [1], [0, 0, 1, 1], [], []>} : vector<16x128xbf16>, vector<128x64xbf16>, vector<16x64xf32> -> vector<16x64xf32>
    %c0_9 = arith.constant 0 : index
    %c0_10 = arith.constant 0 : index
    %12 = vector.load %arg5[%c0_9, %c0_10] : memref<1x64xf32, #tpu.memory_space<vmem>>, vector<1x64xf32>
    %13 = vector.broadcast %12 : vector<1x64xf32> to vector<16x64xf32>
    %14 = arith.addf %11, %13 : vector<16x64xf32>
    %cst_11 = arith.constant 0.000000e+00 : f32
    %15 = vector.broadcast %cst_11 : f32 to vector<16x64xf32>
    %16 = arith.maximumf %14, %15 : vector<16x64xf32>
    %17 = arith.truncf %16 : vector<16x64xf32> to vector<16x64xbf16>
    %c0_12 = arith.constant 0 : index
    %c0_13 = arith.constant 0 : index
    %18 = vector.load %arg6[%c0_12, %c0_13] : memref<64x128xbf16, #tpu.memory_space<vmem>>, vector<64x128xbf16>
    %cst_14 = arith.constant dense<0.000000e+00> : vector<16x128xf32>
    %19 = tpu.matmul %17, %18, %cst_14 {dimension_numbers = #tpu.dot_dimension_numbers<[1], [0], [0], [1], [0, 0, 1, 1], [], []>} : vector<16x64xbf16>, vector<64x128xbf16>, vector<16x128xf32> -> vector<16x128xf32>
    %c0_15 = arith.constant 0 : index
    %c0_16 = arith.constant 0 : index
    %20 = vector.load %arg7[%c0_15, %c0_16] : memref<1x128xf32, #tpu.memory_space<vmem>>, vector<1x128xf32>
    %21 = vector.broadcast %20 : vector<1x128xf32> to vector<16x128xf32>
    %22 = arith.addf %19, %21 : vector<16x128xf32>
    %23 = arith.truncf %22 : vector<16x128xf32> to vector<16x128xbf16>
    %c0_17 = arith.constant 0 : index
    %c0_18 = arith.constant 0 : index
    %24 = vector.load %arg8[%c0_17, %c0_18] : memref<16x128xbf16, #tpu.memory_space<vmem>>, vector<16x128xbf16>
    tpu.vector_store %arg8[%c0_17, %c0_18], %23 {strides = array<i32>} : memref<16x128xbf16, #tpu.memory_space<vmem>>, vector<16x128xbf16>,
    return
  }
  func.func @transform_0(%arg0: i32) -> (i32, i32) {
    %c0_i32 = arith.constant 0 : i32
    %c0_i32_0 = arith.constant 0 : i32
    return %arg0, %c0_i32 : i32, i32
  }
  func.func @transform_1(%arg0: i32) -> (i32, i32) {
    %c0_i32 = arith.constant 0 : i32
    %c0_i32_0 = arith.constant 0 : i32
    %c0_i32_1 = arith.constant 0 : i32
    return %c0_i32, %c0_i32_0 : i32, i32
  }
  func.func @transform_2(%arg0: i32) -> (i32, i32) {
    %c0_i32 = arith.constant 0 : i32
    %c0_i32_0 = arith.constant 0 : i32
    %c0_i32_1 = arith.constant 0 : i32
    return %c0_i32, %c0_i32_0 : i32, i32
  }
  func.func @transform_3(%arg0: i32) -> (i32, i32) {
    %c0_i32 = arith.constant 0 : i32
    %c0_i32_0 = arith.constant 0 : i32
    %c0_i32_1 = arith.constant 0 : i32
    return %c0_i32, %c0_i32_0 : i32, i32
  }
  func.func @transform_4(%arg0: i32) -> (i32, i32) {
    %c0_i32 = arith.constant 0 : i32
    %c0_i32_0 = arith.constant 0 : i32
    %c0_i32_1 = arith.constant 0 : i32
    return %c0_i32, %c0_i32_0 : i32, i32
  }
  func.func @transform_5(%arg0: i32) -> (i32, i32) {
    %c0_i32 = arith.constant 0 : i32
    %c0_i32_0 = arith.constant 0 : i32
    %c0_i32_1 = arith.constant 0 : i32
    return %c0_i32, %c0_i32_0 : i32, i32
  }
  func.func @transform_6(%arg0: i32) -> (i32, i32) {
    %c0_i32 = arith.constant 0 : i32
    %c0_i32_0 = arith.constant 0 : i32
    %c0_i32_1 = arith.constant 0 : i32
    return %c0_i32, %c0_i32_0 : i32, i32
  }
  func.func @transform_7(%arg0: i32) -> (i32, i32) {
    %c0_i32 = arith.constant 0 : i32
    %c0_i32_0 = arith.constant 0 : i32
    return %arg0, %c0_i32 : i32, i32
  }
}

</mosaic_0001>

<bundles_post_ra>
// kernel: tpu_custom_call.1
= control target key start
LH: loop header
LB: loop body
LE: loop exit
PB: predicated region body
PF: predicated region fallthrough
CT: control target
= control target key end

     0   :  { %12 = vsyncpa [#allocation3], 0  ;;  %s1333_s0 = inlined_call_operand.hbm [shape: f32[16,784], index: 0, kind: input, shape index: {}]   ;;  %s1334_s1 = inlined_call_operand.hbm [shape: bf16[784,128], index: 1, kind: input, shape index: {}]   ;;  %s1335_s2 = inlined_call_operand.vmem [shape: f32[1,128], index: 2, kind: input, shape index: {}]   ;;  %s1336_s3 = inlined_call_operand.vmem [shape: bf16[128,64], index: 3, kind: input, shape index: {}]   ;;  %s1337_s4 = inlined_call_operand.vmem [shape: f32[1,64], index: 4, kind: input, shape index: {}]   ;;  %s1338_s5 = inlined_call_operand.vmem [shape: bf16[64,128], index: 5, kind: input, shape index: {}]   ;;  %s1339_s6 = inlined_call_operand.vmem [shape: f32[1,128], index: 6, kind: input, shape index: {}]   ;;  %s1340_s7 = inlined_call_operand.hbm [shape: bf16[16,128], index: 7, kind: output, shape index: {}]  }
   0x1   :  { %13 = vsyncpa [#allocation6], 0 }
   0x2   :  { %14 = vsyncpa [#allocation4], 0  ;;  %s1205_s24 = smov [#allocation2]  }
   0x3   :  { %s20_s25 = sshll.u32 %s1205_s24, 4  ;;  %s21_s25 = int_to_ptr.vmem [resolvable:$true] %s20_s25 }
   0x4   :  { %s1147_s26 = scalar_lea.vmem %s21_s25, 1792  ;;  %p1152_p1 = scmp.lt.s32.totalorder %s21_s25, %s21_s25 }
   0x5   :  { %p1148_p0 = scmp.ne.s32.totalorder %s21_s25, %s1147_s26  ;;  %p1153_p2 = scmp.lt.s32.totalorder %s1147_s26, %s1147_s26 }
   0x7   :  { %p1154_p3 = por %p1153_p2, %p1152_p1 }
   0x9   :  { %p1155_p4 = pnand %p1154_p3, %p1148_p0 }
   0xb   :  { %1158 = shalt.err (!%p1155_p4)
}
   0xc   :  { %s1206_s27 = smov 896   ;;  %s1207_s28 = smov 56  }
   0xd   :  { %26 = dma.hbm_to_vmem [thread:$0]  %s1333_s0, 1792, %s21_s25, [#allocation3], %s1206_s27, %s1206_s27, %s1207_s28  }
   0xe   :  { %s1208_s8 = smov [#allocation5]  }
   0xf   :  { %s32_s9 = sshll.u32 %s1208_s8, 4  ;;  %s33_s9 = int_to_ptr.vmem [resolvable:$true] %s32_s9 }
  0x10   :  { %s1167_s10 = scalar_lea.vmem %s33_s9, 6272  ;;  %p1172_p6 = scmp.lt.s32.totalorder %s33_s9, %s33_s9 }
  0x11   :  { %p1168_p5 = scmp.ne.s32.totalorder %s33_s9, %s1167_s10  ;;  %p1173_p7 = scmp.lt.s32.totalorder %s1167_s10, %s1167_s10 }
  0x13   :  { %p1174_p8 = por %p1173_p7, %p1172_p6 }
  0x15   :  { %p1175_p9 = pnand %p1174_p8, %p1168_p5 }
  0x17   :  { %1178 = shalt.err (!%p1175_p9)
}
  0x18   :  { %s1209_s11 = smov 64   ;;  %s1210_s12 = smov 4  }
  0x19   :  { %38 = dma.hbm_to_vmem [thread:$0]  %s1334_s1, 6272, %s33_s9, [#allocation6], %s1209_s11, %s1209_s11, %s1210_s12  }
  0x1a   :  { %1199 = dma.done.wait [#allocation3], 1792  }
  0x1b   :  { %1200 = vsyncadd [#allocation3], 4294965504 }
  0x1c   :  { %1201 = dma.done.wait [#allocation6], 6272  }
  0x1d   :  { %1202 = vsyncadd [#allocation6], 4294961024  ;;  %v1078_v0 = vld [vmem:[#allocation5 + $0x78] sm:$0xff]   ;;  %v1082_v4 = vld [vmem:[#allocation5 + $0x70] sm:$0xff]   ;;  %v1211_v43 = vmov 0.0   ;;  %vm1212_vm0 = vmmov 0  }
  0x1e   :  { %v1079_v1 = vld [vmem:[#allocation5 + $0x38] sm:$0xff]   ;;  %949 = vmatprep.subr.bf16.mxu0 %v1078_v0  ;;  %v1083_v5 = vld [vmem:[#allocation5 + $0x30] sm:$0xff]   ;;  %v1086_v8 = vld [vmem:[#allocation5 + $0x68] sm:$0xff]   ;;  %vm476_vm1 = vcmask 130048   ;;  %vm801_vm2 = vcmask 523264  }
  0x1f   :  { %v1080_v2 = vld [vmem:[#allocation5 + $0xf8] sm:$0xff]   ;;  %950 = vmatpush3.bf16.msra.mxu0 %v1079_v1  ;;  %v1084_v6 = vld [vmem:[#allocation5 + $0xf0] sm:$0xff]   ;;  %v1087_v9 = vld [vmem:[#allocation5 + $0x28] sm:$0xff]  }
  0x20   :  { %v1081_v3 = vld [vmem:[#allocation5 + $0xb8] sm:$0xff]   ;;  %971 = vmatprep.subr.bf16.mxu1 %v1080_v2  ;;  %951 = vmatprep.subr.bf16.mxu0 %v1082_v4  ;;  %v1085_v7 = vld [vmem:[#allocation5 + $0xb0] sm:$0xff]   ;;  %v1088_v10 = vld [vmem:[#allocation5 + $0xe8] sm:$0xff]  }
  0x21   :  { %972 = vmatpush3.bf16.msra.mxu1 %v1081_v3  ;;  %v1089_v11 = vld [vmem:[#allocation5 + $0xa8] sm:$0xff]   ;;  %v1090_v12 = vld [vmem:[#allocation5 + $0x60] sm:$0xff]   ;;  %v1094_v16 = vld [vmem:[#allocation5 + $0x58] sm:$0xff]  }
  0x22   :  { %973 = vmatprep.subr.bf16.mxu1 %v1084_v6  ;;  %v1091_v13 = vld [vmem:[#allocation5 + $0x20] sm:$0xff]   ;;  %v1095_v17 = vld [vmem:[#allocation5 + $0x18] sm:$0xff]   ;;  %v1098_v20 = vld [vmem:[#allocation5 + $0x50] sm:$0xff]  }
  0x23   :  { %952 = vmatpush3.bf16.msra.mxu0 %v1083_v5  ;;  %v1092_v14 = vld [vmem:[#allocation5 + $0xe0] sm:$0xff]   ;;  %v1096_v18 = vld [vmem:[#allocation5 + $0xd8] sm:$0xff]   ;;  %v1099_v21 = vld [vmem:[#allocation5 + $0x10] sm:$0xff]  }
  0x24   :  { %953 = vmatprep.subr.bf16.mxu0 %v1086_v8  ;;  %v1093_v15 = vld [vmem:[#allocation5 + $0xa0] sm:$0xff]   ;;  %v1097_v19 = vld [vmem:[#allocation5 + $0x98] sm:$0xff]   ;;  %v1100_v22 = vld [vmem:[#allocation5 + $0xd0] sm:$0xff]  }
  0x25   :  { %974 = vmatpush3.bf16.msra.mxu1 %v1085_v7  ;;  %v1101_v23 = vld [vmem:[#allocation5 + $0x90] sm:$0xff]   ;;  %v1102_v24 = vld [vmem:[#allocation5 + $0x48] sm:$0xff]   ;;  %v1106_v28 = vld [vmem:[#allocation5 + $0x40] sm:$0xff]  }
  0x26   :  { %975 = vmatprep.subr.bf16.mxu1 %v1088_v10  ;;  %v1103_v25 = vld [vmem:[#allocation5 + $0x8] sm:$0xff]   ;;  %v1107_v29 = vld [vmem:[#allocation5] sm:$0xff]   ;;  %v57_v31 = vld [vmem:[#allocation2 + $0x8] sm:$0xff] }
  0x27   :  { %954 = vmatpush3.bf16.msra.mxu0 %v1087_v9  ;;  %v1104_v26 = vld [vmem:[#allocation5 + $0xc8] sm:$0xff]   ;;  %v1108_v30 = vld [vmem:[#allocation5 + $0xc0] sm:$0xff]   ;;  %v64_v32 = vld [vmem:[#allocation2 + $0x40] sm:$0xff] }
  0x28   :  { %955 = vmatprep.subr.bf16.mxu0 %v1090_v12  ;;  %v1105_v27 = vld [vmem:[#allocation5 + $0x88] sm:$0xff]   ;;  %v71_v33 = vpack.c.bf16 %v64_v32, %v57_v31  ;;  %v1109_v34 = vld [vmem:[#allocation5 + $0x80] sm:$0xff]   ;;  %v56_v35 = vld [vmem:[#allocation2] sm:$0xff] }
  0x29   :  { %976 = vmatpush3.bf16.msra.mxu1 %v1089_v11  ;;  %v63_v36 = vld [vmem:[#allocation2 + $0x38] sm:$0xff]  ;;  %v1110_v38 = vld [vmem:[#allocation5 + $0x178] sm:$0xff]   ;;  %v66_v40 = vld [vmem:[#allocation2 + $0x50] sm:$0xff] }
  0x2a   :  { %977 = vmatprep.subr.bf16.mxu1 %v1092_v14  ;;  %512 = vmatprep.mubr.bf16.mxu0 %v71_v33  ;;  %v70_v37 = vpack.c.bf16 %v63_v36, %v56_v35  ;;  %v59_v39 = vld [vmem:[#allocation2 + $0x18] sm:$0xff]  ;;  %v1111_v42 = vld [vmem:[#allocation5 + $0x138] sm:$0xff]   ;;  %v58_v44 = vld [vmem:[#allocation2 + $0x10] sm:$0xff] }
  0x2b   :  { %956 = vmatpush3.bf16.msra.mxu0 %v1091_v13  ;;  %v73_v41 = vpack.c.bf16 %v66_v40, %v59_v39  ;;  %v65_v45 = vld [vmem:[#allocation2 + $0x48] sm:$0xff]  ;;  %v1112_v47 = vld [vmem:[#allocation5 + $0x170] sm:$0xff]   ;;  %v1114_v49 = vld [vmem:[#allocation5 + $0x168] sm:$0xff]  }
  0x2c   :  { %957 = vmatprep.subr.bf16.mxu0 %v1094_v16  ;;  %v72_v46 = vpack.c.bf16 %v65_v45, %v58_v44  ;;  %v1113_v48 = vld [vmem:[#allocation5 + $0x130] sm:$0xff]   ;;  %v1115_v50 = vld [vmem:[#allocation5 + $0x128] sm:$0xff]   ;;  %v1116_v51 = vld [vmem:[#allocation5 + $0x160] sm:$0xff]  }
  0x2d   :  { %978 = vmatpush3.bf16.msra.mxu1 %v1093_v15  ;;  %553 = vmatprep.mubr.bf16.mxu1 %v73_v41  ;;  %v1117_v52 = vld [vmem:[#allocation5 + $0x120] sm:$0xff]   ;;  %v1118_v53 = vld [vmem:[#allocation5 + $0x158] sm:$0xff]   ;;  %v1120_v55 = vld [vmem:[#allocation5 + $0x150] sm:$0xff]  }
  0x2e   :  { %979 = vmatprep.subr.bf16.mxu1 %v1096_v18  ;;  %v1119_v54 = vld [vmem:[#allocation5 + $0x118] sm:$0xff]   ;;  %v1126_v56 = vld [vmem:[#allocation5 + $0x180] sm:$0xff]   ;;  %v1121_v58 = vld [vmem:[#allocation5 + $0x110] sm:$0xff]  }
  0x2f   :  { %958 = vmatpush3.bf16.msra.mxu0 %v1095_v17  ;;  %v61_v57 = vld [vmem:[#allocation2 + $0x28] sm:$0xff]  ;;  %v1122_v59 = vld [vmem:[#allocation5 + $0x148] sm:$0xff]   ;;  %v68_v60 = vld [vmem:[#allocation2 + $0x60] sm:$0xff] }
  0x30   :  { %959 = vmatprep.subr.bf16.mxu0 %v1098_v20  ;;  %v75_v61 = vpack.c.bf16 %v68_v60, %v61_v57  ;;  %v62_v62 = vld [vmem:[#allocation2 + $0x30] sm:$0xff]  ;;  %v69_v63 = vld [vmem:[#allocation2 + $0x68] sm:$0xff]  ;;  %v1123_v1 = vld [vmem:[#allocation5 + $0x108] sm:$0xff]  }
  0x31   :  { %980 = vmatpush3.bf16.msra.mxu1 %v1097_v19  ;;  %v76_v0 = vpack.c.bf16 %v69_v63, %v62_v62  ;;  %v1124_v2 = vld [vmem:[#allocation5 + $0x140] sm:$0xff]   ;;  %v60_v4 = vld [vmem:[#allocation2 + $0x20] sm:$0xff]  ;;  %v67_v5 = vld [vmem:[#allocation2 + $0x58] sm:$0xff] }
  0x32   :  { %981 = vmatprep.subr.bf16.mxu1 %v1100_v22  ;;  %v1125_v3 = vld [vmem:[#allocation5 + $0x100] sm:$0xff]   ;;  %v74_v6 = vpack.c.bf16 %v67_v5, %v60_v4  ;;  %v1127_v7 = vld [vmem:[%s1336_s3 + $0x38] sm:$0xff]   ;;  %v1129_v9 = vld [vmem:[%s1336_s3 + $0x28] sm:$0xff]  }
  0x33   :  { %960 = vmatpush3.bf16.msra.mxu0 %v1099_v21  ;;  %v1128_v8 = vld [vmem:[%s1336_s3 + $0x30] sm:$0xff]   ;;  %v1130_v10 = vld [vmem:[%s1336_s3 + $0x20] sm:$0xff]   ;;  %v1131_v11 = vld [vmem:[%s1336_s3 + $0x18] sm:$0xff]  }
  0x34   :  { %961 = vmatprep.subr.bf16.mxu0 %v1102_v24  ;;  %v1132_v12 = vld [vmem:[%s1336_s3 + $0x10] sm:$0xff]   ;;  %v1133_v13 = vld [vmem:[%s1336_s3 + $0x8] sm:$0xff]   ;;  %v1134_v14 = vld [vmem:[%s1336_s3] sm:$0xff]  }
  0x35   :  { %982 = vmatpush3.bf16.msra.mxu1 %v1101_v23  ;;  %v1135_v15 = vld [vmem:[%s1338_s5 + $0x18] sm:$0xff]  }
  0x36   :  { %983 = vmatprep.subr.bf16.mxu1 %v1104_v26 }
  0x37   :  { %962 = vmatpush3.bf16.msra.mxu0 %v1103_v25 }
  0x38   :  { %963 = vmatprep.subr.bf16.mxu0 %v1106_v28  ;;  %v874_v28 = vld [vmem:[%s1335_s2] ss:$0 sm:$0xff] }
  0x39   :  { %984 = vmatpush3.bf16.msra.mxu1 %v1105_v27 }
  0x3a   :  { %985 = vmatprep.subr.bf16.mxu1 %v1108_v30 }
  0x3b   :  { %964 = vmatpush3.bf16.msra.mxu0 %v1107_v29 }
  0x3c   :  { %993 = vmatprep.subr.bf16.mxu0 %v1110_v38 }
  0x3d   :  { %986 = vmatpush3.bf16.msra.mxu1 %v1109_v34 }
  0x3e   :  { %1031 = vmatprep.subr.bf16.mxu1 %v1211_v43  ;;  %513 = vmatmul.mubr.bf16.vlgmr.msra.gmra.mxu0 %v70_v37 }
  0x3f   :  { %994 = vmatpush3.bf16.msra.mxu0 %v1111_v42  ;;  %594 = vmatprep.mubr.bf16.mxu0 %v75_v61 }
  0x40   :  { %554 = vmatmul.mubr.bf16.vlgmr.msra.gmra.mxu1 %v72_v46  ;;  %995 = vmatprep.subr.bf16.mxu0 %v1112_v47 }
  0x41   :  { %1033 = vmatprep.mubr.msk.bf16.mxu1 %vm1212_vm0, %v1211_v43  ;;  %1032 = vmatpush3.bf16.msra.mxu1 %v1126_v56 }
  0x42   :  { %1037 = vmatprep.subr.bf16.mxu1 %v1211_v43 }
  0x43   :  { %996 = vmatpush3.bf16.msra.mxu0 %v1113_v48 }
  0x44   :  { %997 = vmatprep.subr.bf16.mxu0 %v1114_v49 }
  0x47   :  { %998 = vmatpush3.bf16.msra.mxu0 %v1115_v50 }
  0x48   :  { %999 = vmatprep.subr.bf16.mxu0 %v1116_v51  ;;  %1034 = vmatmul.mubr.msk.bf16.vlgmr.msra.gmra.mxu1 %vm476_vm1, %v76_v0  ;;  %v1136_v51 = vld [vmem:[%s1338_s5 + $0x10] sm:$0xff]   ;;  %v934_v0 = vld [vmem:[%s1339_s6] ss:$0 sm:$0xff] }
  0x49   :  { %1053 = vmatprep.mubr.msk.bf16.mxu1 %vm1212_vm0, %v1211_v43  ;;  %1038 = vmatpush3.bf16.msra.mxu1 %v1127_v7 }
  0x4a   :  { %1039 = vmatprep.subr.bf16.mxu1 %v1211_v43 }
  0x4b   :  { %1000 = vmatpush3.bf16.msra.mxu0 %v1117_v52  ;;  %v1137_v52 = vld [vmem:[%s1338_s5 + $0x8] sm:$0xff]  }
  0x4c   :  { %1001 = vmatprep.subr.bf16.mxu0 %v1118_v53  ;;  %v1138_v53 = vld [vmem:[%s1338_s5] sm:$0xff]   ;;  %s1213_s5 = smov [#allocation7]  }
  0x4d   :  { %1040 = vmatpush3.bf16.msra.mxu1 %v1128_v8 }
  0x4e   :  { %1041 = vmatprep.subr.bf16.mxu1 %v1211_v43 }
  0x4f   :  { %1002 = vmatpush3.bf16.msra.mxu0 %v1119_v54  ;;  %v925_v54 = vld [vmem:[%s1337_s4] ss:$0 sm:$0xff]  ;;  %s861_s4 = sshll.u32 %s1213_s5, 4  ;;  %s862_s4 = int_to_ptr.vmem [resolvable:$true] %s861_s4 }
  0x50   :  { %1003 = vmatprep.subr.bf16.mxu0 %v1120_v55  ;;  %s1179_s18 = scalar_lea.vmem %s862_s4, 128  ;;  %p1184_p11 = scmp.lt.s32.totalorder %s862_s4, %s862_s4 }
  0x51   :  { %1042 = vmatpush3.bf16.msra.mxu1 %v1129_v9  ;;  %p1180_p10 = scmp.ne.s32.totalorder %s862_s4, %s1179_s18  ;;  %p1185_p12 = scmp.lt.s32.totalorder %s1179_s18, %s1179_s18 }
  0x52   :  { %1043 = vmatprep.subr.bf16.mxu1 %v1211_v43 }
  0x53   :  { %1004 = vmatpush3.bf16.msra.mxu0 %v1121_v58  ;;  %p1186_p13 = por %p1185_p12, %p1184_p11 }
  0x54   :  { %1005 = vmatprep.subr.bf16.mxu0 %v1122_v59 }
  0x55   :  { %1044 = vmatpush3.bf16.msra.mxu1 %v1130_v10  ;;  %p1187_p0 = pnand %p1186_p13, %p1180_p10 }
  0x56   :  { %1045 = vmatprep.subr.bf16.mxu1 %v1211_v43 }
  0x57   :  { %1006 = vmatpush3.bf16.msra.mxu0 %v1123_v1 }
  0x58   :  { %1007 = vmatprep.subr.bf16.mxu0 %v1124_v2 }
  0x59   :  { %1046 = vmatpush3.bf16.msra.mxu1 %v1131_v11 }
  0x5a   :  { %1047 = vmatprep.subr.bf16.mxu1 %v1211_v43 }
  0x5b   :  { %1008 = vmatpush3.bf16.msra.mxu0 %v1125_v3 }
  0x5c   :  { %1057 = vmatprep.subr.bf16.mxu0 %v1211_v43 }
  0x5d   :  { %1048 = vmatpush3.bf16.msra.mxu1 %v1132_v12 }
  0x5e   :  { %595 = vmatmul.mubr.bf16.vlgmr.msra.gmra.mxu0 %v74_v6  ;;  %1049 = vmatprep.subr.bf16.mxu1 %v1211_v43 }
  0x5f   :  { %1065 = vmatprep.mubr.msk.bf16.mxu0 %vm1212_vm0, %v1211_v43  ;;  %1058 = vmatpush3.bf16.msra.mxu0 %v1135_v15 }
  0x60   :  { %1059 = vmatprep.subr.bf16.mxu0 %v1211_v43 }
  0x61   :  { %1050 = vmatpush3.bf16.msra.mxu1 %v1133_v13 }
  0x62   :  { %1051 = vmatprep.subr.bf16.mxu1 %v1211_v43 }
  0x63   :  { %1060 = vmatpush3.bf16.msra.mxu0 %v1136_v51 }
  0x64   :  { %1061 = vmatprep.subr.bf16.mxu0 %v1211_v43 }
  0x65   :  { %1052 = vmatpush3.bf16.msra.mxu1 %v1134_v14 }
  0x67   :  { %1062 = vmatpush3.bf16.msra.mxu0 %v1137_v52 }
  0x68   :  { %1063 = vmatprep.subr.bf16.mxu0 %v1211_v43 }
  0x6b   :  { %1064 = vmatpush3.bf16.msra.mxu0 %v1138_v53 }
  0xfe   :  { %v965_v19 = vpop.f32.mrf.mxu0 }
 0x100   :  { %v987_v16 = vpop.f32.mrf.mxu1  ;;  %v966_v21 = vpop.f32.mrf.mxu0 }
 0x101   :  { %v967_v27 = vadd.f32 %v966_v21, %v965_v19 }
 0x102   :  { %v988_v17 = vpop.f32.mrf.mxu1  ;;  %v968_v24 = vpop.f32.mrf.mxu0 }
 0x103   :  { %v515_v30 = vadd.f32 %v967_v27, %v874_v28  ;;  %v989_v31 = vadd.f32 %v988_v17, %v987_v16 }
 0x104   :  { %v990_v18 = vpop.f32.mrf.mxu1  ;;  %v969_v29 = vpop.f32.mrf.mxu0 }
 0x105   :  { %v970_v32 = vadd.f32 %v969_v29, %v968_v24  ;;  %v556_v35 = vadd.f32 %v989_v31, %v515_v30 }
 0x106   :  { %v991_v20 = vpop.f32.mrf.mxu1 }
 0x107   :  { %v518_v36 = vadd.f32 %v970_v32, %v874_v28  ;;  %v992_v37 = vadd.f32 %v991_v20, %v990_v18 }
 0x108   :  { %v637_v22 = vpop.f32.mrf.mxu1 }
 0x109   :  { %v559_v42 = vadd.f32 %v992_v37, %v518_v36 }
 0x10a   :  { %v1035_v23 = vpop.f32.mrf.mxu1 }
 0x10c   :  { %v640_v25 = vpop.f32.mrf.mxu1 }
 0x10e   :  { %v1036_v26 = vpop.f32.mrf.mxu1 }
 0x11e   :  { %v1009_v33 = vpop.f32.mrf.mxu0 }
 0x120   :  { %v1010_v34 = vpop.f32.mrf.mxu0 }
 0x121   :  { %v1011_v38 = vadd.f32 %v1010_v34, %v1009_v33 }
 0x122   :  { %v1012_v39 = vpop.f32.mrf.mxu0 }
 0x123   :  { %v597_v40 = vadd.f32 %v1011_v38, %v556_v35 }
 0x124   :  { %v1013_v41 = vpop.f32.mrf.mxu0 }
 0x125   :  { %v1014_v44 = vadd.f32 %v1013_v41, %v1012_v39  ;;  %v638_v45 = vadd.f32 %v637_v22, %v597_v40 }
 0x127   :  { %v600_v46 = vadd.f32 %v1014_v44, %v559_v42  ;;  %v644_v48 = vmax.f32 %v638_v45, 0.0 }
 0x129   :  { %v641_v47 = vadd.f32 %v640_v25, %v600_v46 }
 0x12b   :  { %v645_v49 = vmax.f32 %v641_v47, 0.0 }
 0x12d   :  { %v646_v50 = vpack.c.bf16 %v645_v49, %v644_v48 }
 0x12f   :  { %1054 = vmatmul.mubr.bf16.vlgmr.msra.gmra.mxu1 %v646_v50 }
 0x1ef   :  { %v752_v55 = vpop.f32.mrf.mxu1 }
 0x1f0   :  { %v753_v57 = vadd.f32 %v925_v54, %v752_v55 }
 0x1f1   :  { %v1055_v56 = vpop.f32.mrf.mxu1 }
 0x1f2   :  { %v759_v61 = vmax.f32 %v753_v57, 0.0 }
 0x1f3   :  { %v755_v58 = vpop.f32.mrf.mxu1 }
 0x1f4   :  { %v756_v59 = vadd.f32 %v925_v54, %v755_v58 }
 0x1f5   :  { %v1056_v60 = vpop.f32.mrf.mxu1 }
 0x1f6   :  { %v760_v62 = vmax.f32 %v756_v59, 0.0 }
 0x1f8   :  { %v761_v63 = vpack.c.bf16 %v760_v62, %v759_v61 }
 0x1fa   :  { %1066 = vmatmul.mubr.msk.bf16.vlgmr.msra.gmra.mxu0 %vm801_vm2, %v761_v63 }
 0x2ba   :  { %v839_v43 = vpop.f32.mrf.mxu0 }
 0x2bb   :  { %v840_v3 = vadd.f32 %v934_v0, %v839_v43 }
 0x2bc   :  { %v1067_v1 = vpop.f32.mrf.mxu0 }
 0x2be   :  { %v842_v2 = vpop.f32.mrf.mxu0 }
 0x2bf   :  { %v843_v4 = vadd.f32 %v934_v0, %v842_v2 }
 0x2c0   :  { %v1068_v5 = vpop.f32.mrf.mxu0 }
 0x2c1   :  { %v947_v6 = vpack.c.bf16 %v843_v4, %v840_v3 }
 0x2c3   :  { %948 = vst [vmem:[#allocation7] sm:$0xff] %v947_v6  }
 0x2c4   :  { %1190 = shalt.err (!%p1187_p0)
}
 0x2c5   :  { %867 = dma.vmem_to_hbm [thread:$0]  %s862_s4, 128, %s1340_s7, [#allocation4], %s1209_s11, %s1209_s11, %s1210_s12  }
 0x2c6   :  { %1203 = dma.done.wait [#allocation4], 128  }
 0x2c7   :  { %1204 = vsyncadd [#allocation4], 4294967168 }
 0x2c8   :  { %871 = vsyncpa [#allocation3], 1 }
 0x2c9   :  { %872 = vsyncpa [#allocation6], 1 }
 0x2ca   :  { %873 = vsyncpa [#allocation4], 1 }

</bundles_post_ra>
